<compile_context>
chip_gen: v7x
topology: tpu7x:2x2x1
jax: 0.10.0
libtpu: 0.0.40
codegen_flags: <defaults>
</compile_context>

<pallas_src>
import functools

import jax
import jax.numpy as jnp
import numpy as np
from jax.experimental import pallas as pl
from jax.experimental.pallas import tpu as pltpu


# ------------------------------------------------------------------
# Kernels
# ------------------------------------------------------------------
def _fusion_kernel(w_ref, *refs):
    """w_ref: SMEM (n_present,) softmaxed modal weights. refs = (*emb_refs, o_ref)."""
    *emb_refs, o_ref = refs
    parts = []
    for i, e_ref in enumerate(emb_refs):
        x = e_ref[...].astype(jnp.float32)
        sumsq = jnp.sum(x * x, axis=-1, keepdims=True)
        # 1 / max(||x||, 1e-12) == rsqrt(max(sumsq, 1e-24)); fold in modal weight.
        scale = w_ref[i] * jax.lax.rsqrt(jnp.maximum(sumsq, 1e-24))
        parts.append(x * scale)
    # single lane-dense (tn, sum(D_i)) store
    o_ref[...] = jnp.concatenate(parts, axis=-1).astype(o_ref.dtype)


def _packed_fusion_kernel(dims, w_ref, x_ref, o_ref):
    """Lane-dense variant: x_ref is the already-fused (tn, total) block."""
    x = x_ref[...].astype(jnp.float32)
    y = x * x                                    # full-lane VPU work
    scales = []
    off = 0
    for i, d in enumerate(dims):
        sumsq = jnp.sum(y[:, off:off + d], axis=-1, keepdims=True)
        s = w_ref[i] * jax.lax.rsqrt(jnp.maximum(sumsq, 1e-24))
        scales.append(jnp.broadcast_to(s, (x.shape[0], d)))
        off += d
    o_ref[...] = (x * jnp.concatenate(scales, axis=-1)).astype(o_ref.dtype)


# ------------------------------------------------------------------
# Tile selection
# ------------------------------------------------------------------
def _pick_row_tile(N, row_block, *, bytes_per_row):
    """Largest legal row tile: multiple of 8 (or == N), divides N, fits VMEM budget."""
    if row_block is not None:
        if row_block >= N:
            return N
        if N % row_block != 0 or row_block % 8 != 0:
            raise ValueError(
                f"row_block={row_block} must be a multiple of 8 that divides "
                f"N={N} (or be >= N).")
        return row_block
    # Conservative double-buffered VMEM budget: safe on v5e (16 MiB scoped
    # default) and v7x (64 MiB physical); ~512-row tiles already hit ~85% of
    # HBM roofline while keeping >=2 blocks for megacore when N is large.
    budget = 8 << 20
    target = max(8, min(512, (budget // max(bytes_per_row, 1)) // 8 * 8))
    if N <= target:
        return N
    if N % 8 != 0:
        # TODO(synk): ragged N > target would need a masked final block; a
        # full-array block is still layout-legal and correct, so use it.
        return N
    for cand in range(target, 7, -8):
        if N % cand == 0:
            return cand
    return N


# ------------------------------------------------------------------
# Wrappers
# ------------------------------------------------------------------
def multimodal_fusion(embs, weight, *, row_block=None, out_dtype=None):
    """JAX/Pallas equivalent of MultiModalFusion.forward.

    embs   : list of length modal_num; entries are (N, D_i) arrays or None
    weight : (modal_num, 1) raw fusion weights (softmaxed over dim 0 here)
    returns: (N, sum(D_i over non-None entries)) joint embedding
    """
    modal_num = weight.shape[0]
    assert len(embs) == modal_num
    present = [(i, e) for i, e in enumerate(embs) if e is not None]
    assert present, "at least one modality must be present"
    idxs = [i for i, _ in present]
    arrs = [e for _, e in present]
    N = arrs[0].shape[0]
    dims = [int(a.shape[1]) for a in arrs]
    total = sum(dims)
    out_dtype = out_dtype or arrs[0].dtype

    # Softmax over ALL modal weights (matches torch even if some embs are None);
    # a (modal_num,)-sized op, done once outside the kernel.
    w_norm = jax.nn.softmax(weight.astype(jnp.float32), axis=0).reshape(-1)
    w_sel = w_norm[jnp.asarray(idxs, dtype=jnp.int32)]

    # double-buffered (inputs + output), f32-compute sized
    bytes_per_row = 2 * (total + total) * 4
    tn = _pick_row_tile(N, row_block, bytes_per_row=bytes_per_row)
    grid = (N // tn,)

    in_specs = [pl.BlockSpec((len(arrs),), lambda i: (0,),
                             memory_space=pltpu.MemorySpace.SMEM)]
    in_specs += [pl.BlockSpec((tn, d), lambda i: (i, 0)) for d in dims]
    out_specs = pl.BlockSpec((tn, total), lambda i: (i, 0))

    return pl.pallas_call(
        _fusion_kernel,
        out_shape=jax.ShapeDtypeStruct((N, total), out_dtype),
        grid=grid,
        in_specs=in_specs,
        out_specs=out_specs,
        compiler_params=pltpu.CompilerParams(
            dimension_semantics=("parallel",)),
    )(w_sel, *arrs)


def multimodal_fusion_packed(emb_cat, dims, weight, *, row_block=None,
                             out_dtype=None):
    """Same math when the fused (N, sum(D_i)) layout already exists upstream:
    one lane-dense load + one lane-dense store per tile (all modalities present)."""
    modal_num = weight.shape[0]
    dims = tuple(int(d) for d in dims)
    assert len(dims) == modal_num and sum(dims) == emb_cat.shape[1]
    N, total = emb_cat.shape
    out_dtype = out_dtype or emb_cat.dtype

    w_norm = jax.nn.softmax(weight.astype(jnp.float32), axis=0).reshape(-1)
    bytes_per_row = 2 * (total + total) * 4
    tn = _pick_row_tile(N, row_block, bytes_per_row=bytes_per_row)

    return pl.pallas_call(
        functools.partial(_packed_fusion_kernel, dims),
        out_shape=jax.ShapeDtypeStruct((N, total), out_dtype),
        grid=(N // tn,),
        in_specs=[pl.BlockSpec((modal_num,), lambda i: (0,),
                               memory_space=pltpu.MemorySpace.SMEM),
                  pl.BlockSpec((tn, total), lambda i: (i, 0))],
        out_specs=pl.BlockSpec((tn, total), lambda i: (i, 0)),
        compiler_params=pltpu.CompilerParams(
            dimension_semantics=("parallel",)),
    )(w_norm, emb_cat)


# ------------------------------------------------------------------
if __name__ == "__main__":
    MODAL_NUM = 6
    DIMS = [32] * MODAL_NUM                       # per-modality embedding widths
    weight = jnp.ones((MODAL_NUM, 1), jnp.float32)  # nn.Parameter(torch.ones((modal_num, 1)))

    def reference(embs, w):
        wn = jax.nn.softmax(w.astype(jnp.float32), axis=0)
        parts = []
        for i, e in enumerate(embs):
            if e is None:
                continue
            nrm = jnp.maximum(jnp.sqrt(jnp.sum(e * e, axis=1, keepdims=True)), 1e-12)
            parts.append(wn[i] * (e / nrm))
        return jnp.concatenate(parts, axis=1)

    key = jax.random.PRNGKey(0)

    # --- small check (N=16): single full-array row block ---
    keys = jax.random.split(key, MODAL_NUM)
    embs_small = [jax.random.normal(keys[i], (16, DIMS[i]), jnp.float32)
                  for i in range(MODAL_NUM)]
    out_small = jax.block_until_ready(multimodal_fusion(embs_small, weight))
    np.testing.assert_allclose(np.asarray(out_small),
                               np.asarray(reference(embs_small, weight)),
                               rtol=1e-4, atol=1e-5)
    assert out_small.shape == (16, sum(DIMS))
    assert bool(jnp.all(jnp.isfinite(out_small)))

    # --- multi-block check (N=2048): tn=512, grid=(4,) exercises pipelining ---
    keys2 = jax.random.split(jax.random.fold_in(key, 1), MODAL_NUM)
    embs_big = [jax.random.normal(keys2[i], (2048, DIMS[i]), jnp.float32)
                for i in range(MODAL_NUM)]
    out_big = jax.block_until_ready(multimodal_fusion(embs_big, weight))
    np.testing.assert_allclose(np.asarray(out_big),
                               np.asarray(reference(embs_big, weight)),
                               rtol=1e-4, atol=1e-5)

    # --- packed-layout path (fused input already resident upstream) ---
    emb_cat = jnp.concatenate(embs_big, axis=1)
    out_packed = jax.block_until_ready(
        multimodal_fusion_packed(emb_cat, DIMS, weight))
    np.testing.assert_allclose(np.asarray(out_packed), np.asarray(out_big),
                               rtol=1e-4, atol=1e-5)

    print("KERNEL_OK")
</pallas_src>

<mosaic_0001>
module attributes {stable_mosaic.version = 11 : i64} {
  func.func @_fusion_kernel(%arg0: i32, %arg1: memref<6xf32, #tpu.memory_space<smem>>, %arg2: memref<16x32xf32, #tpu.memory_space<vmem>>, %arg3: memref<16x32xf32, #tpu.memory_space<vmem>>, %arg4: memref<16x32xf32, #tpu.memory_space<vmem>>, %arg5: memref<16x32xf32, #tpu.memory_space<vmem>>, %arg6: memref<16x32xf32, #tpu.memory_space<vmem>>, %arg7: memref<16x32xf32, #tpu.memory_space<vmem>>, %arg8: memref<16x192xf32, #tpu.memory_space<vmem>>) attributes {dimension_semantics = [#tpu.dimension_semantics<parallel>], iteration_bounds = array<i64: 1>, scalar_prefetch = 0 : i64, scratch_operands = 0 : i64, tpu.core_type = #tpu.core_type<tc>, window_params = [{transform_indices = @transform_0, window_bounds = array<i64: 6>}, {transform_indices = @transform_1, window_bounds = array<i64: 16, 32>}, {transform_indices = @transform_2, window_bounds = array<i64: 16, 32>}, {transform_indices = @transform_3, window_bounds = array<i64: 16, 32>}, {transform_indices = @transform_4, window_bounds = array<i64: 16, 32>}, {transform_indices = @transform_5, window_bounds = array<i64: 16, 32>}, {transform_indices = @transform_6, window_bounds = array<i64: 16, 32>}, {transform_indices = @transform_7, window_bounds = array<i64: 16, 192>}]} {
    %c0 = arith.constant 0 : index
    %c0_0 = arith.constant 0 : index
    %0 = vector.load %arg2[%c0, %c0_0] : memref<16x32xf32, #tpu.memory_space<vmem>>, vector<16x32xf32>
    %1 = arith.mulf %0, %0 : vector<16x32xf32>
    %cst = arith.constant dense<0.000000e+00> : vector<16xf32>
    %2 = vector.multi_reduction <add>, %1, %cst [1] : vector<16x32xf32> to vector<16xf32>
    %3 = vector.shape_cast %2 : vector<16xf32> to vector<16x1xf32>
    %c0_1 = arith.constant 0 : index
    %4 = memref.load %arg1[%c0_1] : memref<6xf32, #tpu.memory_space<smem>>
    %cst_2 = arith.constant 1.000000e-24 : f32
    %5 = vector.broadcast %cst_2 : f32 to vector<16x1xf32>
    %6 = arith.maximumf %3, %5 : vector<16x1xf32>
    %7 = math.rsqrt %6 : vector<16x1xf32>
    %8 = vector.broadcast %4 : f32 to vector<16x1xf32>
    %9 = arith.mulf %8, %7 : vector<16x1xf32>
    %10 = vector.broadcast %9 : vector<16x1xf32> to vector<16x32xf32>
    %11 = arith.mulf %0, %10 : vector<16x32xf32>
    %c0_3 = arith.constant 0 : index
    %c0_4 = arith.constant 0 : index
    %12 = vector.load %arg3[%c0_3, %c0_4] : memref<16x32xf32, #tpu.memory_space<vmem>>, vector<16x32xf32>
    %13 = arith.mulf %12, %12 : vector<16x32xf32>
    %cst_5 = arith.constant dense<0.000000e+00> : vector<16xf32>
    %14 = vector.multi_reduction <add>, %13, %cst_5 [1] : vector<16x32xf32> to vector<16xf32>
    %15 = vector.shape_cast %14 : vector<16xf32> to vector<16x1xf32>
    %c1 = arith.constant 1 : index
    %16 = memref.load %arg1[%c1] : memref<6xf32, #tpu.memory_space<smem>>
    %cst_6 = arith.constant 1.000000e-24 : f32
    %17 = vector.broadcast %cst_6 : f32 to vector<16x1xf32>
    %18 = arith.maximumf %15, %17 : vector<16x1xf32>
    %19 = math.rsqrt %18 : vector<16x1xf32>
    %20 = vector.broadcast %16 : f32 to vector<16x1xf32>
    %21 = arith.mulf %20, %19 : vector<16x1xf32>
    %22 = vector.broadcast %21 : vector<16x1xf32> to vector<16x32xf32>
    %23 = arith.mulf %12, %22 : vector<16x32xf32>
    %c0_7 = arith.constant 0 : index
    %c0_8 = arith.constant 0 : index
    %24 = vector.load %arg4[%c0_7, %c0_8] : memref<16x32xf32, #tpu.memory_space<vmem>>, vector<16x32xf32>
    %25 = arith.mulf %24, %24 : vector<16x32xf32>
    %cst_9 = arith.constant dense<0.000000e+00> : vector<16xf32>
    %26 = vector.multi_reduction <add>, %25, %cst_9 [1] : vector<16x32xf32> to vector<16xf32>
    %27 = vector.shape_cast %26 : vector<16xf32> to vector<16x1xf32>
    %c2 = arith.constant 2 : index
    %28 = memref.load %arg1[%c2] : memref<6xf32, #tpu.memory_space<smem>>
    %cst_10 = arith.constant 1.000000e-24 : f32
    %29 = vector.broadcast %cst_10 : f32 to vector<16x1xf32>
    %30 = arith.maximumf %27, %29 : vector<16x1xf32>
    %31 = math.rsqrt %30 : vector<16x1xf32>
    %32 = vector.broadcast %28 : f32 to vector<16x1xf32>
    %33 = arith.mulf %32, %31 : vector<16x1xf32>
    %34 = vector.broadcast %33 : vector<16x1xf32> to vector<16x32xf32>
    %35 = arith.mulf %24, %34 : vector<16x32xf32>
    %c0_11 = arith.constant 0 : index
    %c0_12 = arith.constant 0 : index
    %36 = vector.load %arg5[%c0_11, %c0_12] : memref<16x32xf32, #tpu.memory_space<vmem>>, vector<16x32xf32>
    %37 = arith.mulf %36, %36 : vector<16x32xf32>
    %cst_13 = arith.constant dense<0.000000e+00> : vector<16xf32>
    %38 = vector.multi_reduction <add>, %37, %cst_13 [1] : vector<16x32xf32> to vector<16xf32>
    %39 = vector.shape_cast %38 : vector<16xf32> to vector<16x1xf32>
    %c3 = arith.constant 3 : index
    %40 = memref.load %arg1[%c3] : memref<6xf32, #tpu.memory_space<smem>>
    %cst_14 = arith.constant 1.000000e-24 : f32
    %41 = vector.broadcast %cst_14 : f32 to vector<16x1xf32>
    %42 = arith.maximumf %39, %41 : vector<16x1xf32>
    %43 = math.rsqrt %42 : vector<16x1xf32>
    %44 = vector.broadcast %40 : f32 to vector<16x1xf32>
    %45 = arith.mulf %44, %43 : vector<16x1xf32>
    %46 = vector.broadcast %45 : vector<16x1xf32> to vector<16x32xf32>
    %47 = arith.mulf %36, %46 : vector<16x32xf32>
    %c0_15 = arith.constant 0 : index
    %c0_16 = arith.constant 0 : index
    %48 = vector.load %arg6[%c0_15, %c0_16] : memref<16x32xf32, #tpu.memory_space<vmem>>, vector<16x32xf32>
    %49 = arith.mulf %48, %48 : vector<16x32xf32>
    %cst_17 = arith.constant dense<0.000000e+00> : vector<16xf32>
    %50 = vector.multi_reduction <add>, %49, %cst_17 [1] : vector<16x32xf32> to vector<16xf32>
    %51 = vector.shape_cast %50 : vector<16xf32> to vector<16x1xf32>
    %c4 = arith.constant 4 : index
    %52 = memref.load %arg1[%c4] : memref<6xf32, #tpu.memory_space<smem>>
    %cst_18 = arith.constant 1.000000e-24 : f32
    %53 = vector.broadcast %cst_18 : f32 to vector<16x1xf32>
    %54 = arith.maximumf %51, %53 : vector<16x1xf32>
    %55 = math.rsqrt %54 : vector<16x1xf32>
    %56 = vector.broadcast %52 : f32 to vector<16x1xf32>
    %57 = arith.mulf %56, %55 : vector<16x1xf32>
    %58 = vector.broadcast %57 : vector<16x1xf32> to vector<16x32xf32>
    %59 = arith.mulf %48, %58 : vector<16x32xf32>
    %c0_19 = arith.constant 0 : index
    %c0_20 = arith.constant 0 : index
    %60 = vector.load %arg7[%c0_19, %c0_20] : memref<16x32xf32, #tpu.memory_space<vmem>>, vector<16x32xf32>
    %61 = arith.mulf %60, %60 : vector<16x32xf32>
    %cst_21 = arith.constant dense<0.000000e+00> : vector<16xf32>
    %62 = vector.multi_reduction <add>, %61, %cst_21 [1] : vector<16x32xf32> to vector<16xf32>
    %63 = vector.shape_cast %62 : vector<16xf32> to vector<16x1xf32>
    %c5 = arith.constant 5 : index
    %64 = memref.load %arg1[%c5] : memref<6xf32, #tpu.memory_space<smem>>
    %cst_22 = arith.constant 1.000000e-24 : f32
    %65 = vector.broadcast %cst_22 : f32 to vector<16x1xf32>
    %66 = arith.maximumf %63, %65 : vector<16x1xf32>
    %67 = math.rsqrt %66 : vector<16x1xf32>
    %68 = vector.broadcast %64 : f32 to vector<16x1xf32>
    %69 = arith.mulf %68, %67 : vector<16x1xf32>
    %70 = vector.broadcast %69 : vector<16x1xf32> to vector<16x32xf32>
    %71 = arith.mulf %60, %70 : vector<16x32xf32>
    %72 = tpu.concatenate %11, %23, %35, %47, %59, %71 in 1 : vector<16x32xf32>, vector<16x32xf32>, vector<16x32xf32>, vector<16x32xf32>, vector<16x32xf32>, vector<16x32xf32> -> vector<16x192xf32>
    %c0_23 = arith.constant 0 : index
    %c0_24 = arith.constant 0 : index
    %73 = vector.load %arg8[%c0_23, %c0_24] : memref<16x192xf32, #tpu.memory_space<vmem>>, vector<16x192xf32>
    tpu.vector_store %arg8[%c0_23, %c0_24], %72 {strides = array<i32>} : memref<16x192xf32, #tpu.memory_space<vmem>>, vector<16x192xf32>,
    return
  }
  func.func @transform_0(%arg0: i32) -> i32 {
    %c0_i32 = arith.constant 0 : i32
    %c0_i32_0 = arith.constant 0 : i32
    return %c0_i32 : i32
  }
  func.func @transform_1(%arg0: i32) -> (i32, i32) {
    %c0_i32 = arith.constant 0 : i32
    %c0_i32_0 = arith.constant 0 : i32
    return %arg0, %c0_i32 : i32, i32
  }
  func.func @transform_2(%arg0: i32) -> (i32, i32) {
    %c0_i32 = arith.constant 0 : i32
    %c0_i32_0 = arith.constant 0 : i32
    return %arg0, %c0_i32 : i32, i32
  }
  func.func @transform_3(%arg0: i32) -> (i32, i32) {
    %c0_i32 = arith.constant 0 : i32
    %c0_i32_0 = arith.constant 0 : i32
    return %arg0, %c0_i32 : i32, i32
  }
  func.func @transform_4(%arg0: i32) -> (i32, i32) {
    %c0_i32 = arith.constant 0 : i32
    %c0_i32_0 = arith.constant 0 : i32
    return %arg0, %c0_i32 : i32, i32
  }
  func.func @transform_5(%arg0: i32) -> (i32, i32) {
    %c0_i32 = arith.constant 0 : i32
    %c0_i32_0 = arith.constant 0 : i32
    return %arg0, %c0_i32 : i32, i32
  }
  func.func @transform_6(%arg0: i32) -> (i32, i32) {
    %c0_i32 = arith.constant 0 : i32
    %c0_i32_0 = arith.constant 0 : i32
    return %arg0, %c0_i32 : i32, i32
  }
  func.func @transform_7(%arg0: i32) -> (i32, i32) {
    %c0_i32 = arith.constant 0 : i32
    %c0_i32_0 = arith.constant 0 : i32
    return %arg0, %c0_i32 : i32, i32
  }
}

</mosaic_0001>

<bundles_post_ra>
// kernel: tpu_custom_call.1
= control target key start
LH: loop header
LB: loop body
LE: loop exit
PB: predicated region body
PF: predicated region fallthrough
CT: control target
= control target key end

     0   :  { %12 = vsyncpa [#allocation5], 0  ;;  %s749_s0 = inlined_call_operand.hbm [shape: f32[6], index: 0, kind: input, shape index: {}]   ;;  %s750_s1 = inlined_call_operand.hbm [shape: f32[16,32], index: 1, kind: input, shape index: {}]   ;;  %s751_s2 = inlined_call_operand.hbm [shape: f32[16,32], index: 2, kind: input, shape index: {}]   ;;  %s752_s3 = inlined_call_operand.hbm [shape: f32[16,32], index: 3, kind: input, shape index: {}]   ;;  %s753_s4 = inlined_call_operand.hbm [shape: f32[16,32], index: 4, kind: input, shape index: {}]   ;;  %s754_s5 = inlined_call_operand.vmem [shape: f32[16,32], index: 5, kind: input, shape index: {}]   ;;  %s755_s6 = inlined_call_operand.hbm [shape: f32[16,32], index: 6, kind: input, shape index: {}]   ;;  %s756_s7 = inlined_call_operand.hbm [shape: f32[16,192], index: 7, kind: output, shape index: {}]  }
   0x1   :  { %13 = vsyncpa [#allocation3], 0 }
   0x2   :  { %14 = vsyncpa [#allocation8], 0 }
   0x3   :  { %15 = vsyncpa [#allocation11], 0 }
   0x4   :  { %16 = vsyncpa [#allocation4], 0  ;;  %s488_s24 = smov [#allocation7]   ;;  %s489_s26 = smov [#allocation10]  }
   0x5   :  { %s42_s25 = sshll.u32 %s488_s24, 4  ;;  %s66_s27 = sshll.u32 %s489_s26, 4  ;;  %s43_s25 = int_to_ptr.vmem [resolvable:$true] %s42_s25  ;;  %s542_s27 = int_to_ptr.vmem [resolvable:$true] %s66_s27 }
   0x6   :  { %s336_s30 = scalar_lea.hbm %s751_s2, 256 }
   0x7   :  { %p337_p0 = scmp.ne.s32.totalorder %s751_s2, %s336_s30  ;;  %p340_p1 = scmp.lt.u32.totalorder %s336_s30, %s751_s2 }
   0x9   :  { %p342_p2 = pnand %p340_p1, %p337_p0 }
   0xb   :  { %345 = shalt.err (!%p342_p2)
}
   0xc   :  { %s346_s12 = scalar_lea.vmem %s43_s25, 256  ;;  %p351_p4 = scmp.lt.s32.totalorder %s43_s25, %s43_s25 }
   0xd   :  { %p347_p3 = scmp.ne.s32.totalorder %s43_s25, %s346_s12  ;;  %p352_p5 = scmp.lt.s32.totalorder %s346_s12, %s346_s12 }
   0xf   :  { %p353_p6 = por %p352_p5, %p351_p4 }
  0x11   :  { %p354_p7 = pnand %p353_p6, %p347_p3 }
  0x13   :  { %357 = shalt.err (!%p354_p7)
}
  0x14   :  { %s490_s13 = smov 128   ;;  %s491_s14 = smov 8  }
  0x15   :  { %48 = dma.hbm_to_vmem [thread:$0]  %s751_s2, 256, %s43_s25, [#allocation8], %s490_s13, %s490_s13, %s491_s14  }
  0x16   :  { %s358_s19 = scalar_lea.hbm %s753_s4, 256 }
  0x17   :  { %p359_p8 = scmp.ne.s32.totalorder %s753_s4, %s358_s19  ;;  %p362_p9 = scmp.lt.u32.totalorder %s358_s19, %s753_s4 }
  0x19   :  { %p364_p10 = pnand %p362_p9, %p359_p8 }
  0x1b   :  { %367 = shalt.err (!%p364_p10)
}
  0x1c   :  { %s368_s24 = scalar_lea.vmem %s542_s27, 256  ;;  %p373_p12 = scmp.lt.s32.totalorder %s542_s27, %s542_s27 }
  0x1d   :  { %p369_p11 = scmp.ne.s32.totalorder %s542_s27, %s368_s24  ;;  %p374_p13 = scmp.lt.s32.totalorder %s368_s24, %s368_s24 }
  0x1f   :  { %p375_p0 = por %p374_p13, %p373_p12 }
  0x21   :  { %p376_p1 = pnand %p375_p0, %p369_p11 }
  0x23   :  { %379 = shalt.err (!%p376_p1)
}
  0x24   :  { %72 = dma.hbm_to_vmem [thread:$0]  %s753_s4, 256, %s542_s27, [#allocation11], %s490_s13, %s490_s13, %s491_s14  }
  0x25   :  { %s380_s29 = scalar_lea.hbm %s749_s0, 16 }
  0x26   :  { %p381_p2 = scmp.ne.s32.totalorder %s749_s0, %s380_s29  ;;  %p384_p3 = scmp.lt.u32.totalorder %s380_s29, %s749_s0 }
  0x28   :  { %p386_p4 = pnand %p384_p3, %p381_p2 }
  0x2a   :  { %389 = shalt.err (!%p386_p4)
}
  0x2b   :  { %s492_s11 = smov [#allocation2]   ;;  %s493_s4 = smov [#allocation6]  }
  0x2c   :  { %24 = dma.hbm_to_smem %s749_s0, 16, %s492_s11, [#allocation5]  }
  0x2d   :  { %s30_s27 = sshll.u32 %s493_s4, 4  ;;  %s494_s16 = smov [#allocation9]   ;;  %s31_s27 = int_to_ptr.vmem [resolvable:$true] %s30_s27 }
  0x2e   :  { %s54_s17 = sshll.u32 %s494_s16, 4  ;;  %s390_s20 = scalar_lea.hbm %s750_s1, 256  ;;  %s55_s17 = int_to_ptr.vmem [resolvable:$true] %s54_s17 }
  0x2f   :  { %p391_p5 = scmp.ne.s32.totalorder %s750_s1, %s390_s20  ;;  %p394_p6 = scmp.lt.u32.totalorder %s390_s20, %s750_s1 }
  0x31   :  { %p396_p7 = pnand %p394_p6, %p391_p5 }
  0x33   :  { %399 = shalt.err (!%p396_p7)
}
  0x34   :  { %s400_s0 = scalar_lea.vmem %s31_s27, 256  ;;  %p405_p9 = scmp.lt.s32.totalorder %s31_s27, %s31_s27 }
  0x35   :  { %p401_p8 = scmp.ne.s32.totalorder %s31_s27, %s400_s0  ;;  %p406_p10 = scmp.lt.s32.totalorder %s400_s0, %s400_s0 }
  0x37   :  { %p407_p11 = por %p406_p10, %p405_p9 }
  0x39   :  { %p408_p12 = pnand %p407_p11, %p401_p8 }
  0x3b   :  { %411 = shalt.err (!%p408_p12)
}
  0x3c   :  { %36 = dma.hbm_to_vmem [thread:$0]  %s750_s1, 256, %s31_s27, [#allocation3], %s490_s13, %s490_s13, %s491_s14  }
  0x3d   :  { %s412_s29 = scalar_lea.hbm %s752_s3, 256 }
  0x3e   :  { %p413_p13 = scmp.ne.s32.totalorder %s752_s3, %s412_s29  ;;  %p416_p0 = scmp.lt.u32.totalorder %s412_s29, %s752_s3 }
  0x40   :  { %p418_p1 = pnand %p416_p0, %p413_p13 }
  0x42   :  { %421 = shalt.err (!%p418_p1)
}
  0x43   :  { %s422_s11 = scalar_lea.vmem %s55_s17, 256  ;;  %p427_p3 = scmp.lt.s32.totalorder %s55_s17, %s55_s17 }
  0x44   :  { %p423_p2 = scmp.ne.s32.totalorder %s55_s17, %s422_s11  ;;  %p428_p4 = scmp.lt.s32.totalorder %s422_s11, %s422_s11 }
  0x46   :  { %p429_p5 = por %p428_p4, %p427_p3 }
  0x48   :  { %p430_p6 = pnand %p429_p5, %p423_p2 }
  0x4a   :  { %433 = shalt.err (!%p430_p6)
}
  0x4b   :  { %60 = dma.hbm_to_vmem [thread:$0]  %s752_s3, 256, %s55_s17, [#allocation8], %s490_s13, %s490_s13, %s491_s14  }
  0x4c   :  { %s495_s15 = smov [#allocation12]   ;;  %s434_s18 = scalar_lea.hbm %s755_s6, 256 }
  0x4d   :  { %s80_s4 = sshll.u32 %s495_s15, 4  ;;  %p435_p7 = scmp.ne.s32.totalorder %s755_s6, %s434_s18  ;;  %s81_s4 = int_to_ptr.vmem [resolvable:$true] %s80_s4 }
  0x4e   :  { %p438_p8 = scmp.lt.u32.totalorder %s434_s18, %s755_s6 }
  0x50   :  { %p440_p9 = pnand %p438_p8, %p435_p7 }
  0x52   :  { %443 = shalt.err (!%p440_p9)
}
  0x53   :  { %s444_s23 = scalar_lea.vmem %s81_s4, 256  ;;  %p449_p11 = scmp.lt.s32.totalorder %s81_s4, %s81_s4 }
  0x54   :  { %p445_p10 = scmp.ne.s32.totalorder %s81_s4, %s444_s23  ;;  %p450_p12 = scmp.lt.s32.totalorder %s444_s23, %s444_s23 }
  0x56   :  { %p451_p13 = por %p450_p12, %p449_p11 }
  0x58   :  { %p452_p0 = pnand %p451_p13, %p445_p10 }
  0x5a   :  { %455 = shalt.err (!%p452_p0)
}
  0x5b   :  { %86 = dma.hbm_to_vmem [thread:$0]  %s755_s6, 256, %s81_s4, [#allocation11], %s490_s13, %s490_s13, %s491_s14  }
  0x5c   :  { %478 = dma.done.wait [#allocation5], 16  }
  0x5d   :  { %479 = vsyncadd [#allocation5], 4294967280 }
  0x5e   :  { %480 = dma.done.wait [#allocation3], 256  }
  0x5f   :  { %481 = vsyncadd [#allocation3], 4294967040 }
  0x60   :  { %482 = dma.done.wait [#allocation8], 512  }
  0x61   :  { %483 = vsyncadd [#allocation8], 4294966784 }
  0x62   :  { %484 = dma.done.wait [#allocation11], 512  }
  0x63   :  { %485 = vsyncadd [#allocation11], 4294966784 }
  0x64   :  { %105 = sfence }
  0x65   :  { %vm110_vm0 = vcmask 261120   ;;  %v636_v0 = vld [vmem:[#allocation7] sm:$0xff]  ;;  %v638_v1 = vld [vmem:[#allocation7 + $0x8] sm:$0xff]  ;;  %v640_v2 = vld [vmem:[#allocation9] sm:$0xff]  ;;  %s704_s0 = sld [smem:[#allocation2 + $0x2]]  ;;  %s707_s2 = sld [smem:[#allocation2 + $0x3]] }
  0x66   :  { %v129_v3 = vmul.f32 %v636_v0, %v636_v0  ;;  %v130_v4 = vmul.f32 %v638_v1, %v638_v1  ;;  %v149_v5 = vmul.f32 %v640_v2, %v640_v2  ;;  %v648_v6 = vld [vmem:[#allocation9 + $0x8] sm:$0xff]  ;;  %v650_v7 = vld [vmem:[#allocation10] sm:$0xff]  ;;  %v654_v9 = vld [vmem:[#allocation10 + $0x8] sm:$0xff]  ;;  %s297_s25 = sld [smem:[#allocation2 + $0x5]]  ;;  %s496_s26 = smov 32   ;;  %vm261_vm1 = vcmask 523264  }
  0x67   :  { %v150_v8 = vmul.f32 %v648_v6, %v648_v6  ;;  %v169_v13 = vmul.f32 %v650_v7, %v650_v7  ;;  %v170_v15 = vmul.f32 %v654_v9, %v654_v9  ;;  %v664_v16 = vld [vmem:[#allocation12 + $0x8] sm:$0xff]  ;;  %v666_v17 = vld [vmem:[#allocation12] sm:$0xff]  ;;  %v687_v28 = vld [vmem:[%s754_s5] sm:$0xff]  ;;  %s497_s28 = smov 64   ;;  %s498_s29 = smov 96   ;;  %vm264_vm2 = vcmask 785408  }
  0x68   :  { %v131_v10 = vsel %vm110_vm0, %v129_v3, 0.0  ;;  %v151_v11 = vsel %vm110_vm0, %v149_v5, 0.0  ;;  %v134_v12 = vsel %vm110_vm0, %v130_v4, 0.0  ;;  %v210_v20 = vmul.f32 %v664_v16, %v664_v16  ;;  %v674_v22 = vld [vmem:[#allocation6] sm:$0xff]  ;;  %v676_v23 = vld [vmem:[#allocation6 + $0x8] sm:$0xff]  ;;  %v692_v29 = vld [vmem:[%s754_s5 + $0x8] sm:$0xff] }
  0x69   :  { %132 = vadd.xlane.f32.xlu0 %v131_v10  ;;  %152 = vadd.xlane.f32.xlu1 %v151_v11  ;;  %v154_v14 = vsel %vm110_vm0, %v150_v8, 0.0  ;;  %v171_v18 = vsel %vm110_vm0, %v169_v13, 0.0  ;;  %v174_v19 = vsel %vm110_vm0, %v170_v15, 0.0  ;;  %v209_v21 = vmul.f32 %v666_v17, %v666_v17  ;;  %s702_s5 = sld [smem:[#allocation2 + $0x1]]  ;;  %s117_s30 = sld [smem:[#allocation2]] }
  0x6a   :  { %v214_v24 = vsel %vm110_vm0, %v210_v20, 0.0  ;;  %v108_v26 = vmul.f32 %v674_v22, %v674_v22  ;;  %v109_v27 = vmul.f32 %v676_v23, %v676_v23  ;;  %v189_v32 = vmul.f32 %v687_v28, %v687_v28  ;;  %s296_s8 = sld [smem:[#allocation2 + $0x4]]  ;;  %s499_s9 = smov [#allocation13]  }
  0x6b   :  { %v211_v25 = vsel %vm110_vm0, %v209_v21, 0.0  ;;  %v190_v33 = vmul.f32 %v692_v29, %v692_v29  ;;  %v162_v56 = vstv %s704_s0  ;;  %v182_v62 = vstv %s707_s2  ;;  %s278_s10 = sshll.u32 %s499_s9, 4  ;;  %s279_s10 = int_to_ptr.vmem [resolvable:$true] %s278_s10 }
  0x6c   :  { %v111_v30 = vsel %vm110_vm0, %v108_v26, 0.0  ;;  %v114_v31 = vsel %vm110_vm0, %v109_v27, 0.0  ;;  %v191_v34 = vsel %vm110_vm0, %v189_v32, 0.0  ;;  %v222_v11 = vstv %s297_s25  ;;  %s456_s11 = scalar_lea.vmem %s279_s10, 512  ;;  %p461_p2 = scmp.lt.s32.totalorder %s279_s10, %s279_s10 }
  0x6d   :  { %135 = vadd.xlane.f32.xlu0 %v134_v12  ;;  %155 = vadd.xlane.f32.xlu1 %v154_v14  ;;  %v194_v35 = vsel %vm110_vm0, %v190_v33, 0.0  ;;  %p457_p1 = scmp.ne.s32.totalorder %s279_s10, %s456_s11  ;;  %p462_p3 = scmp.lt.s32.totalorder %s456_s11, %s456_s11 }
  0x6f   :  { %v142_v48 = vstv %s702_s5  ;;  %v122_v27 = vstv %s117_s30  ;;  %p463_p4 = por %p462_p3, %p461_p2 }
  0x71   :  { %172 = vadd.xlane.f32.xlu0 %v171_v18  ;;  %175 = vadd.xlane.f32.xlu1 %v174_v19  ;;  %p464_p5 = pnand %p463_p4, %p457_p1 }
  0x75   :  { %215 = vadd.xlane.f32.xlu1 %v214_v24  ;;  %212 = vadd.xlane.f32.xlu0 %v211_v25 }
  0x79   :  { %112 = vadd.xlane.f32.xlu0 %v111_v30  ;;  %115 = vadd.xlane.f32.xlu1 %v114_v31 }
  0x7d   :  { %192 = vadd.xlane.f32.xlu0 %v191_v34  ;;  %195 = vadd.xlane.f32.xlu1 %v194_v35 }
  0xf6   :  { %v133_v36 = vpop.xlane.xlu0 %132  ;;  %v153_v37 = vpop.xlane.xlu1 %152 }
  0xf7   :  { %v138_v38 = vmax.f32 %v133_v36, 1e-24  ;;  %v158_v39 = vmax.f32 %v153_v37, 1e-24  ;;  %v202_v36 = vstv %s296_s8 }
  0xf9   :  { %312 = vrsqrt.f32 %v138_v38 }
  0xfa   :  { %v136_v40 = vpop.xlane.xlu0 %135  ;;  %v156_v41 = vpop.xlane.xlu1 %155  ;;  %314 = vrsqrt.f32 %v158_v39 }
  0xfb   :  { %v139_v42 = vmax.f32 %v136_v40, 1e-24  ;;  %v159_v43 = vmax.f32 %v156_v41, 1e-24 }
  0xfd   :  { %316 = vrsqrt.f32 %v139_v42 }
  0xfe   :  { %v173_v44 = vpop.xlane.xlu0 %172  ;;  %v176_v45 = vpop.xlane.xlu1 %175  ;;  %318 = vrsqrt.f32 %v159_v43 }
  0xff   :  { %v178_v46 = vmax.f32 %v173_v44, 1e-24  ;;  %v179_v47 = vmax.f32 %v176_v45, 1e-24 }
 0x101   :  { %320 = vrsqrt.f32 %v178_v46 }
 0x102   :  { %v216_v49 = vpop.xlane.xlu1 %215  ;;  %v213_v50 = vpop.xlane.xlu0 %212  ;;  %322 = vrsqrt.f32 %v179_v47 }
 0x103   :  { %v313_v51 = vpop.eup %312  ;;  %v219_v52 = vmax.f32 %v216_v49, 1e-24  ;;  %v218_v53 = vmax.f32 %v213_v50, 1e-24 }
 0x104   :  { %v143_v54 = vmul.f32 %v313_v51, %v142_v48  ;;  %v315_v55 = vpop.eup %314 }
 0x105   :  { %324 = vrsqrt.f32 %v218_v53  ;;  %v163_v60 = vmul.f32 %v315_v55, %v162_v56 }
 0x106   :  { %v145_v57 = vmul.f32 %v143_v54, %v636_v0  ;;  %326 = vrsqrt.f32 %v219_v52  ;;  %v113_v20 = vpop.xlane.xlu0 %112 }
 0x107   :  { %v317_v58 = vpop.eup %316  ;;  %v165_v4 = vmul.f32 %v163_v60, %v640_v2  ;;  %v118_v21 = vmax.f32 %v113_v20, 1e-24 }
 0x108   :  { %229 = vrot.lane.b32.xlu0 %v145_v57, %s496_s26  ;;  %v144_v59 = vmul.f32 %v317_v58, %v142_v48  ;;  %v319_v61 = vpop.eup %318 }
 0x109   :  { %v164_v0 = vmul.f32 %v319_v61, %v162_v56  ;;  %328 = vrsqrt.f32 %v118_v21 }
 0x10a   :  { %v146_v63 = vmul.f32 %v144_v59, %v638_v1  ;;  %v193_v24 = vpop.xlane.xlu0 %192 }
 0x10b   :  { %v321_v3 = vpop.eup %320  ;;  %v166_v13 = vmul.f32 %v164_v0, %v648_v6  ;;  %v116_v6 = vpop.xlane.xlu1 %115  ;;  %v198_v25 = vmax.f32 %v193_v24, 1e-24 }
 0x10c   :  { %231 = vrot.lane.b32.xlu1 %v146_v63, %s496_s26  ;;  %v183_v5 = vmul.f32 %v321_v3, %v182_v62  ;;  %v323_v8 = vpop.eup %322  ;;  %v119_v26 = vmax.f32 %v116_v6, 1e-24 }
 0x10d   :  { %v184_v14 = vmul.f32 %v323_v8, %v182_v62  ;;  %330 = vrsqrt.f32 %v198_v25 }
 0x10e   :  { %v185_v10 = vmul.f32 %v183_v5, %v650_v7  ;;  %332 = vrsqrt.f32 %v119_v26 }
 0x10f   :  { %v325_v12 = vpop.eup %324  ;;  %v186_v2 = vmul.f32 %v184_v14, %v654_v9 }
 0x110   :  { %237 = vrot.lane.b32.xlu1 %v165_v4, %s497_s28  ;;  %245 = vrot.lane.b32.xlu0 %v185_v10, %s498_s29  ;;  %v327_v1 = vpop.eup %326  ;;  %v223_v15 = vmul.f32 %v325_v12, %v222_v11 }
 0x111   :  { %v224_v19 = vmul.f32 %v327_v1, %v222_v11 }
 0x112   :  { %v225_v18 = vmul.f32 %v223_v15, %v666_v17  ;;  %v196_v17 = vpop.xlane.xlu1 %195 }
 0x113   :  { %v226_v7 = vmul.f32 %v224_v19, %v664_v16  ;;  %v329_v9 = vpop.eup %328  ;;  %v199_v30 = vmax.f32 %v196_v17, 1e-24 }
 0x114   :  { %239 = vrot.lane.b32.xlu1 %v166_v13, %s497_s28  ;;  %253 = vrot.lane.b32.xlu0 %v225_v18, %s496_s26  ;;  %v123_v31 = vmul.f32 %v329_v9, %v122_v27 }
 0x115   :  { %334 = vrsqrt.f32 %v199_v30 }
 0x116   :  { %v125_v33 = vmul.f32 %v123_v31, %v674_v22 }
 0x117   :  { %v331_v16 = vpop.eup %330 }
 0x118   :  { %247 = vrot.lane.b32.xlu1 %v186_v2, %s498_s29  ;;  %v333_v32 = vpop.eup %332  ;;  %v203_v37 = vmul.f32 %v331_v16, %v202_v36 }
 0x119   :  { %v124_v38 = vmul.f32 %v333_v32, %v122_v27 }
 0x11a   :  { %v205_v44 = vmul.f32 %v203_v37, %v687_v28 }
 0x11b   :  { %v126_v45 = vmul.f32 %v124_v38, %v676_v23 }
 0x11c   :  { %255 = vrot.lane.b32.xlu1 %v226_v7, %s496_s26 }
 0x11f   :  { %v335_v22 = vpop.eup %334 }
 0x120   :  { %v204_v50 = vmul.f32 %v335_v22, %v202_v36 }
 0x122   :  { %v206_v23 = vmul.f32 %v204_v50, %v692_v29 }
 0x17a   :  { %v230_v34 = vpop.permute.xlu0 %229 }
 0x17b   :  { %v259_v39 = vsel %vm110_vm0, %v125_v33, %v230_v34 }
 0x17e   :  { %v232_v35 = vpop.permute.xlu1 %231 }
 0x17f   :  { %v260_v49 = vsel %vm110_vm0, %v126_v45, %v232_v35 }
 0x182   :  { %v238_v40 = vpop.permute.xlu1 %237  ;;  %v246_v41 = vpop.permute.xlu0 %245 }
 0x183   :  { %v262_v42 = vsel %vm261_vm1, %v259_v39, %v238_v40 }
 0x184   :  { %v265_v43 = vsel %vm264_vm2, %v262_v42, %v246_v41 }
 0x185   :  { %269 = vst [vmem:[#allocation13] sm:$0xff] %v265_v43 }
 0x186   :  { %v240_v46 = vpop.permute.xlu1 %239  ;;  %v254_v47 = vpop.permute.xlu0 %253 }
 0x187   :  { %v267_v48 = vsel %vm110_vm0, %v205_v44, %v254_v47  ;;  %v263_v51 = vsel %vm261_vm1, %v260_v49, %v240_v46 }
 0x188   :  { %270 = vst.msk [vmem:[#allocation13 + $0x8] sm:$0xff] %vm261_vm1, %v267_v48 }
 0x18a   :  { %v248_v52 = vpop.permute.xlu1 %247 }
 0x18b   :  { %v266_v28 = vsel %vm264_vm2, %v263_v51, %v248_v52 }
 0x18c   :  { %271 = vst [vmem:[#allocation13 + $0x10] sm:$0xff] %v266_v28 }
 0x18e   :  { %v256_v53 = vpop.permute.xlu1 %255 }
 0x18f   :  { %v268_v54 = vsel %vm110_vm0, %v206_v23, %v256_v53 }
 0x190   :  { %272 = vst.msk [vmem:[#allocation13 + $0x18] sm:$0xff] %vm261_vm1, %v268_v54 }
 0x191   :  { %467 = shalt.err (!%p464_p5)
}
 0x192   :  { %s468_s15 = scalar_lea.hbm %s756_s7, 512 }
 0x193   :  { %p469_p6 = scmp.ne.s32.totalorder %s756_s7, %s468_s15  ;;  %p472_p7 = scmp.lt.u32.totalorder %s468_s15, %s756_s7 }
 0x195   :  { %p474_p8 = pnand %p472_p7, %p469_p6 }
 0x197   :  { %477 = shalt.err (!%p474_p8)
}
 0x198   :  { %s500_s19 = smov 256   ;;  %s501_s20 = smov 16  }
 0x199   :  { %284 = dma.vmem_to_hbm [thread:$0]  %s279_s10, 512, %s756_s7, [#allocation4], %s500_s19, %s500_s19, %s501_s20  }
 0x19a   :  { %486 = dma.done.wait [#allocation4], 512  }
 0x19b   :  { %487 = vsyncadd [#allocation4], 4294966784 }
 0x19c   :  { %288 = vsyncpa [#allocation3], 1 }
 0x19d   :  { %289 = vsyncpa [#allocation8], 1 }
 0x19e   :  { %290 = vsyncpa [#allocation11], 1 }
 0x19f   :  { %291 = vsyncpa [#allocation4], 1 }
 0x1a0   :  { %292 = vsyncpa [#allocation5], 1 }

</bundles_post_ra>
